<compile_context>
chip_gen: v5e
topology: v5e:2x2
jax: 0.10.0
libtpu: 0.0.40
codegen_flags: <defaults>
</compile_context>

<pallas_src>
import jax
import jax.numpy as jnp
from jax.experimental import pallas as pl
from jax.experimental.pallas import tpu as pltpu


def _round_up(x: int, m: int) -> int:
    return ((x + m - 1) // m) * m


def _fused_head_kernel(feat_ref, w_ref, b_ref, out_ref):
    """Fused (deltas | classification) Dense head — one MXU matmul per tile.

    feat_ref : (TM, C)      VMEM  bf16   streamed row tile
    w_ref    : (C, OUT_P)   VMEM  bf16   fused, lane-padded weight (resident)
    b_ref    : (1, OUT_P)   VMEM  f32    fused, lane-padded bias   (resident)
    out_ref  : (TM, OUT_P)  VMEM  f32    output tile
    """
    out_ref[...] = (
        jnp.dot(feat_ref[...], w_ref[...], preferred_element_type=jnp.float32)
        + b_ref[...]
    )


def _pick_row_tile(N, C, out_p, requested, vmem_budget=24 << 20):
    """Largest row tile (multiple of 8, <= requested) whose double-buffered
    feature + output tiles plus the resident fused weight fit the budget."""
    resident = C * out_p * 2 + out_p * 4                      # bf16 W + f32 b
    per_row = 2 * (C * 2) + 2 * (out_p * 4)                   # 2x in, 2x out buf
    cap = max((vmem_budget - resident) // max(per_row, 1), 8)
    tm = min(_round_up(requested, 8), _round_up(max(N, 1), 8), _round_up(cap, 8))
    return max(tm, 8)


def detection_head_forward(features, batch_indices, params,
                           num_classes, dim, num_anchors,
                           row_tile=1024):
    """Pallas-backed equivalent of DetectionHead.forward.

    :param features:      (N, C) float32
    :param batch_indices: (N,)   int32
    :param params:        dict with 'wd', 'bd' and (if num_classes>0) 'wc', 'bc'
    :param row_tile:      max rows per grid step (multiple of 8).
    :returns: (deltas (N*A, 2*D), class_ids (N*A, K) or None, batch_idx (N*A,))
    """
    N, C = features.shape
    A = num_anchors
    out_d = A * dim * 2
    out_c = A * num_classes if num_classes > 0 else 0
    out_total = out_d + out_c
    out_p = _round_up(out_total, 128)          # lane-dense output slab

    # ---- Host-side glue: fuse + lane-pad the weights / biases. -------------
    wd = params["wd"].astype(jnp.float32)
    bd = params["bd"].reshape(-1).astype(jnp.float32)
    if num_classes > 0:
        w_cat = jnp.concatenate([wd, params["wc"].astype(jnp.float32)], axis=1)
        b_cat = jnp.concatenate([bd, params["bc"].reshape(-1).astype(jnp.float32)],
                                axis=0)
    else:
        w_cat, b_cat = wd, bd
    w_pad = jnp.zeros((C, out_p), jnp.float32).at[:, :out_total].set(w_cat)
    b_pad = jnp.zeros((1, out_p), jnp.float32).at[:, :out_total].set(b_cat)

    # bf16 MXU operands (f32 accumulation inside the kernel).
    feat_bf16 = features.astype(jnp.bfloat16)
    w_bf16 = w_pad.astype(jnp.bfloat16)

    # ---- Row tiling: multiple of 8 sublanes, VMEM-aware, capped. -----------
    tm = _pick_row_tile(N, C, out_p, row_tile)
    grid = (pl.cdiv(N, tm),)

    cost = pl.CostEstimate(
        flops=2 * N * C * out_p,
        transcendentals=0,
        bytes_accessed=int(N * C * 2 + C * out_p * 2 + out_p * 4
                           + N * out_p * 4),
    )

    out_full = pl.pallas_call(
        _fused_head_kernel,
        out_shape=jax.ShapeDtypeStruct((N, out_p), jnp.float32),
        grid=grid,
        in_specs=[
            # Streamed feature tiles (double-buffered by default).
            pl.BlockSpec((tm, C), lambda i: (i, 0)),
            # Weight / bias: constant block index -> stay resident in VMEM.
            pl.BlockSpec((C, out_p), lambda i: (0, 0)),
            pl.BlockSpec((1, out_p), lambda i: (0, 0)),
        ],
        out_specs=pl.BlockSpec((tm, out_p), lambda i: (i, 0)),
        compiler_params=pltpu.CompilerParams(
            dimension_semantics=("parallel",)),   # megacore sharding on v7x
        cost_estimate=cost,
    )(feat_bf16, w_bf16, b_pad)

    # ---- Glue: strip lane padding, reshape, replicate batch indices. --------
    deltas = out_full[:, :out_d].reshape(N * A, dim * 2)
    class_ids = (out_full[:, out_d:out_d + out_c].reshape(N * A, num_classes)
                 if num_classes > 0 else None)
    batch_out = jnp.repeat(batch_indices, A)      # == stack([bi]*A, 1).reshape(-1)
    return deltas, class_ids, batch_out


def init_params(key, in_channels, num_classes, dim, num_anchors):
    """Deterministic synthetic Dense parameters (Linear: y = x @ W + b)."""
    out_d = num_anchors * dim * 2
    k1, k2, k3, k4 = jax.random.split(key, 4)
    scale = 1.0 / jnp.sqrt(in_channels)
    params = {
        "wd": jax.random.uniform(k1, (in_channels, out_d), jnp.float32,
                                 -scale, scale),
        "bd": jax.random.uniform(k2, (out_d,), jnp.float32, -scale, scale),
    }
    if num_classes > 0:
        out_c = num_anchors * num_classes
        params["wc"] = jax.random.uniform(k3, (in_channels, out_c), jnp.float32,
                                          -scale, scale)
        params["bc"] = jax.random.uniform(k4, (out_c,), jnp.float32,
                                          -scale, scale)
    return params


if __name__ == "__main__":
    # Small, module-consistent shapes: N feature vectors of depth C.
    N, C = 8, 32
    num_classes, dim, num_anchors = 4, 2, 9

    key = jax.random.PRNGKey(0)
    k_feat, k_param = jax.random.split(key)
    features = jax.random.normal(k_feat, (N, C), jnp.float32)
    batch_indices = jnp.arange(N, dtype=jnp.int32) % 2  # e.g. batch of 2

    params = init_params(k_param, C, num_classes, dim, num_anchors)

    deltas, class_ids, batch_out = detection_head_forward(
        features, batch_indices, params, num_classes, dim, num_anchors)
    jax.block_until_ready(deltas)
    jax.block_until_ready(class_ids)
    jax.block_until_ready(batch_out)

    # Plain-JAX f32 reference of the PyTorch semantics (bf16 MXU inputs ->
    # loose tolerance; f32 accumulation keeps error ~1e-3 at these scales).
    ref_deltas = (features @ params["wd"] + params["bd"]).reshape(
        N * num_anchors, dim * 2)
    ref_cls = (features @ params["wc"] + params["bc"]).reshape(
        N * num_anchors, num_classes)
    ref_batch = jnp.stack([batch_indices] * num_anchors, axis=1).reshape(-1)

    assert deltas.shape == (N * num_anchors, 2 * dim)
    assert class_ids.shape == (N * num_anchors, num_classes)
    assert batch_out.shape == (N * num_anchors,)
    assert jnp.allclose(deltas, ref_deltas, atol=2e-2, rtol=2e-2)
    assert jnp.allclose(class_ids, ref_cls, atol=2e-2, rtol=2e-2)
    assert jnp.array_equal(batch_out, ref_batch)

    # Also exercise: (a) num_classes <= 0 path (no classification matmul)
    # and (b) a partial last row-tile (N not a multiple of the tile).
    N2 = 20
    feat2 = jax.random.normal(jax.random.PRNGKey(3), (N2, C), jnp.float32)
    bi2 = jnp.arange(N2, dtype=jnp.int32) % 2
    d2, c2, b2 = detection_head_forward(
        feat2, bi2, params, 0, dim, num_anchors, row_tile=16)
    jax.block_until_ready(d2)
    ref_d2 = (feat2 @ params["wd"] + params["bd"]).reshape(
        N2 * num_anchors, dim * 2)
    assert c2 is None
    assert d2.shape == (N2 * num_anchors, 2 * dim)
    assert jnp.allclose(d2, ref_d2, atol=2e-2, rtol=2e-2)
    assert jnp.array_equal(b2, jnp.repeat(bi2, num_anchors))

    print("KERNEL_OK")
</pallas_src>

<mosaic_0001>
module attributes {stable_mosaic.version = 11 : i64} {
  func.func @_fused_head_kernel(%arg0: i32, %arg1: memref<8x32xbf16, #tpu.memory_space<vmem>>, %arg2: memref<32x128xbf16, #tpu.memory_space<vmem>>, %arg3: memref<1x128xf32, #tpu.memory_space<vmem>>, %arg4: memref<8x128xf32, #tpu.memory_space<vmem>>) attributes {dimension_semantics = [#tpu.dimension_semantics<parallel>], iteration_bounds = array<i64: 1>, scalar_prefetch = 0 : i64, scratch_operands = 0 : i64, tpu.core_type = #tpu.core_type<tc>, window_params = [{transform_indices = @transform_0, window_bounds = array<i64: 8, 32>}, {pipeline_mode = #tpu.pipeline_mode<synchronous>, transform_indices = @transform_1, window_bounds = array<i64: 32, 128>}, {pipeline_mode = #tpu.pipeline_mode<synchronous>, transform_indices = @transform_2, window_bounds = array<i64: 1, 128>}, {transform_indices = @transform_3, window_bounds = array<i64: 8, 128>}]} {
    %c0 = arith.constant 0 : index
    %c0_0 = arith.constant 0 : index
    %0 = vector.load %arg1[%c0, %c0_0] : memref<8x32xbf16, #tpu.memory_space<vmem>>, vector<8x32xbf16>
    %c0_1 = arith.constant 0 : index
    %c0_2 = arith.constant 0 : index
    %1 = vector.load %arg2[%c0_1, %c0_2] : memref<32x128xbf16, #tpu.memory_space<vmem>>, vector<32x128xbf16>
    %cst = arith.constant dense<0.000000e+00> : vector<8x128xf32>
    %2 = tpu.matmul %0, %1, %cst {dimension_numbers = #tpu.dot_dimension_numbers<[1], [0], [0], [1], [0, 0, 1, 1], [], []>} : vector<8x32xbf16>, vector<32x128xbf16>, vector<8x128xf32> -> vector<8x128xf32>
    %c0_3 = arith.constant 0 : index
    %c0_4 = arith.constant 0 : index
    %3 = vector.load %arg3[%c0_3, %c0_4] : memref<1x128xf32, #tpu.memory_space<vmem>>, vector<1x128xf32>
    %4 = vector.broadcast %3 : vector<1x128xf32> to vector<8x128xf32>
    %5 = arith.addf %2, %4 : vector<8x128xf32>
    %c0_5 = arith.constant 0 : index
    %c0_6 = arith.constant 0 : index
    %6 = vector.load %arg4[%c0_5, %c0_6] : memref<8x128xf32, #tpu.memory_space<vmem>>, vector<8x128xf32>
    tpu.vector_store %arg4[%c0_5, %c0_6], %5 {strides = array<i32>} : memref<8x128xf32, #tpu.memory_space<vmem>>, vector<8x128xf32>,
    return
  }
  func.func @transform_0(%arg0: i32) -> (i32, i32) {
    %c0_i32 = arith.constant 0 : i32
    %c0_i32_0 = arith.constant 0 : i32
    return %arg0, %c0_i32 : i32, i32
  }
  func.func @transform_1(%arg0: i32) -> (i32, i32) {
    %c0_i32 = arith.constant 0 : i32
    %c0_i32_0 = arith.constant 0 : i32
    %c0_i32_1 = arith.constant 0 : i32
    return %c0_i32, %c0_i32_0 : i32, i32
  }
  func.func @transform_2(%arg0: i32) -> (i32, i32) {
    %c0_i32 = arith.constant 0 : i32
    %c0_i32_0 = arith.constant 0 : i32
    %c0_i32_1 = arith.constant 0 : i32
    return %c0_i32, %c0_i32_0 : i32, i32
  }
  func.func @transform_3(%arg0: i32) -> (i32, i32) {
    %c0_i32 = arith.constant 0 : i32
    %c0_i32_0 = arith.constant 0 : i32
    return %arg0, %c0_i32 : i32, i32
  }
}

</mosaic_0001>

<bundles_post_ra>
// kernel: tpu_custom_call.1
= control target key start
LH: loop header
LB: loop body
LE: loop exit
PB: predicated region body
PF: predicated region fallthrough
CT: control target
= control target key end

     0   :  { %8 = vsyncpa [#allocation3], 0  ;;  %s235_s0 = inlined_call_operand.hbm [shape: bf16[8,32], index: 0, kind: input, shape index: {}]   ;;  %s236_s1 = inlined_call_operand.hbm [shape: bf16[32,128], index: 1, kind: input, shape index: {}]   ;;  %s237_s2 = inlined_call_operand.vmem [shape: f32[1,128], index: 2, kind: input, shape index: {}]   ;;  %s238_s3 = inlined_call_operand.hbm [shape: f32[8,128], index: 3, kind: output, shape index: {}]  }
   0x1   :  { %9 = vsyncpa [#allocation6], 0 }
   0x2   :  { %10 = vsyncpa [#allocation4], 0  ;;  %s16_s14 = sshll.u32 %s235_s0, 4  ;;  %s198_s15 = smov [#allocation2]   ;;  %s17_s14 = int_to_ptr.hbm [resolvable:$true] %s16_s14 }
   0x3   :  { %s18_s16 = sshll.u32 %s198_s15, 4  ;;  %s26_s19 = sshll.u32 %s236_s1, 4  ;;  %s19_s16 = int_to_ptr.vmem [resolvable:$true] %s18_s16  ;;  %s27_s19 = int_to_ptr.hbm [resolvable:$true] %s26_s19 }
   0x4   :  { %21 = dma.hbm_to_vmem [thread:$0]  %s17_s14, 64, %s19_s16, [#allocation3]  }
   0x5   :  { %s199_s20 = smov [#allocation5]   ;;  %s200_s22 = smov 64  }
   0x6   :  { %s28_s21 = sshll.u32 %s199_s20, 4  ;;  %s201_s23 = smov 4   ;;  %s29_s21 = int_to_ptr.vmem [resolvable:$true] %s28_s21 }
   0x7   :  { %34 = dma.hbm_to_vmem [thread:$0]  %s27_s19, 256, %s29_s21, [#allocation6], %s200_s22, %s200_s22, %s201_s23  }
   0x8   :  { %192 = dma.done.wait [#allocation3], 64  }
   0x9   :  { %193 = vsyncadd [#allocation3], 4294967232 }
   0xa   :  { %194 = dma.done.wait [#allocation6], 256  }
   0xb   :  { %195 = vsyncadd [#allocation6], 4294967040  ;;  %v113_v0 = vld [vmem:[#allocation5 + $0x8] sm:$0xff]  ;;  %v112_v1 = vld [vmem:[#allocation5] sm:$0xff]  ;;  %vm67_vm0 = vcmask 261120   ;;  %s202_s24 = smov [#allocation7]  }
   0xc   :  { %77 = vmatpush.bf16.msra.mxu0 %v113_v0  ;;  %v46_v2 = vld [vmem:[#allocation2] sm:$0xf]  ;;  %s90_s25 = sshll.u32 %s202_s24, 4  ;;  %s92_s28 = sshll.u32 %s238_s3, 4  ;;  %s91_s25 = int_to_ptr.vmem [resolvable:$true] %s90_s25  ;;  %s93_s28 = int_to_ptr.hbm [resolvable:$true] %s92_s28 }
   0xd   :  { %v119_v3 = vld [vmem:[%s237_s2] ss:$0 sm:$0xff] }
  0x10   :  { %78 = vmatpush.bf16.msra.mxu0 %v112_v1 }
  0x13   :  { %111 = vmatmul.msk.bf16.vlgmr.msra.gmra.mxu0 %vm67_vm0, %v46_v2 }
  0x90   :  { %v80_v4 = vpop.f32.mrf.mxu0 }
  0x91   :  { %v81_v5 = vadd.f32 %v119_v3, %v80_v4 }
  0x93   :  { %84 = vst [vmem:[#allocation7] sm:$0xff] %v81_v5 }
  0x94   :  { %95 = dma.vmem_to_hbm [thread:$0]  %s91_s25, 128, %s93_s28, [#allocation4]  }
  0x98   :  { %v82_v6 = vpop.f32.mrf.mxu0 }
  0x99   :  { %196 = dma.done.wait [#allocation4], 128  }
  0x9a   :  { %197 = vsyncadd [#allocation4], 4294967168 }
  0x9b   :  { %100 = vsyncpa [#allocation3], 1 }
  0x9c   :  { %101 = vsyncpa [#allocation6], 1 }
  0x9d   :  { %102 = vsyncpa [#allocation4], 1 }

</bundles_post_ra>
